<compile_context>
chip_gen: v7x
topology: tpu7x:2x2x1
jax: 0.10.0
libtpu: 0.0.40
codegen_flags: <defaults>
</compile_context>

<pallas_src>
import functools

import jax
import jax.numpy as jnp
from jax.experimental import pallas as pl
from jax.experimental.pallas import tpu as pltpu


_LANE = 128      # lane width of a vreg (last dim alignment)
_SUBLANE = 8     # sublane count for f32 (second-to-last dim alignment)
_VMEM_LIMIT_BYTES = 48 * 1024 * 1024   # < 64 MiB physical VMEM on v7x, well under v5e/v6e
_FUSED_VMEM_BUDGET = 16 * 1024 * 1024  # conservative: keep fused path well inside VMEM


def _round_up(x, m):
    return ((x + m - 1) // m) * m


def _pick_tile(total, candidates):
    """Largest candidate that evenly divides `total` (total is a multiple of 128)."""
    for c in candidates:
        if c <= total and total % c == 0:
            return c
    return total


# ---------------------------------------------------------------------------
# Activations (applied inside the kernels, on f32 values).
# ---------------------------------------------------------------------------
def _apply_activation(y, act, valid_n):
    """Apply FC_vec activation to y (..., N_pad). valid_n = true (unpadded) width,
    only needed for softmax (lane-mixing) so padded lanes don't pollute the sum."""
    if act == "linear":
        return y
    if act in ("relu", "relu_not_inplace"):
        return jnp.maximum(y, 0.0)
    if act == "sigmoid":
        return jax.nn.sigmoid(y)
    if act == "softplus":
        return jax.nn.softplus(y)
    if act == "tanh":
        return jnp.tanh(y)
    if act == "leakyrelu":
        # FC_vec uses nn.LeakyReLU(0.2), not the torch default 0.01.
        return jnp.where(y >= 0.0, y, 0.2 * y)
    if act == "softmax":
        if valid_n < y.shape[-1]:
            lane = jax.lax.broadcasted_iota(jnp.int32, y.shape, dimension=y.ndim - 1)
            y = jnp.where(lane < valid_n, y, -jnp.inf)
        m = jnp.max(y, axis=-1, keepdims=True)
        e = jnp.exp(y - m)
        return e / jnp.sum(e, axis=-1, keepdims=True)
    if act == "selu":
        return jax.nn.selu(y)
    if act == "elu":
        return jax.nn.elu(y)
    if act == "gelu":
        return jax.nn.gelu(y, approximate=False)  # torch nn.GELU default = exact erf
    raise ValueError(f"Unexpected activation: {act}")


# ---------------------------------------------------------------------------
# Path 1: fully fused MLP — one pallas_call for the whole network.
# ---------------------------------------------------------------------------
def _fused_mlp_kernel(*refs, acts, out_dims):
    n_layers = len(acts)
    x_ref = refs[0]
    o_ref = refs[1 + 2 * n_layers]

    h = x_ref[...].astype(jnp.float32)
    for i in range(n_layers):
        w = refs[1 + 2 * i][...]
        b = refs[2 + 2 * i][...]
        y = jnp.dot(h.astype(w.dtype), w, preferred_element_type=jnp.float32)
        y = y + b.astype(jnp.float32)
        h = _apply_activation(y, acts[i], out_dims[i])
    o_ref[...] = h.astype(o_ref.dtype)


def _fused_forward(params, acts, x):
    B, f_in = x.shape
    dtype = x.dtype
    f_out = params[-1][0].shape[1]

    # Pad every feature dim to a multiple of 128 lanes; padded rows/cols/bias are zero.
    in_pad = _round_up(f_in, _LANE)
    padded, out_dims = [], []
    prev_pad = in_pad
    for (w, b) in params:
        d_in, d_out = w.shape
        d_out_pad = _round_up(d_out, _LANE)
        w_p = jnp.zeros((prev_pad, d_out_pad), w.dtype).at[:d_in, :d_out].set(w)
        b_p = jnp.zeros((1, d_out_pad), b.dtype).at[:, :d_out].set(b.reshape(1, -1))
        padded.append((w_p, b_p))
        out_dims.append(d_out)
        prev_pad = d_out_pad
    out_pad = prev_pad

    # Batch tiling on a single "parallel" grid axis (v7x megacore sharding for large B).
    tm = min(256, _round_up(B, _SUBLANE))
    m_pad = _round_up(B, tm)
    x_p = jnp.zeros((m_pad, in_pad), dtype).at[:B, :f_in].set(x)

    in_specs = [pl.BlockSpec((tm, in_pad), lambda i: (i, 0))]
    flat_inputs = [x_p]
    for (w_p, b_p) in padded:
        in_specs.append(pl.BlockSpec(w_p.shape, lambda i: (0, 0)))
        in_specs.append(pl.BlockSpec(b_p.shape, lambda i: (0, 0)))
        flat_inputs += [w_p, b_p]

    kernel = functools.partial(
        _fused_mlp_kernel, acts=tuple(acts), out_dims=tuple(out_dims))

    out_p = pl.pallas_call(
        kernel,
        out_shape=jax.ShapeDtypeStruct((m_pad, out_pad), dtype),
        grid=(m_pad // tm,),
        in_specs=in_specs,
        out_specs=pl.BlockSpec((tm, out_pad), lambda i: (i, 0)),
        compiler_params=pltpu.CompilerParams(
            dimension_semantics=("parallel",),
            vmem_limit_bytes=_VMEM_LIMIT_BYTES,
        ),
    )(*flat_inputs)
    return out_p[:B, :f_out]


def _fused_vmem_estimate_bytes(params, x):
    """Rough VMEM estimate (2x headroom for double buffering) for the fused path."""
    B, f_in = x.shape
    tm = min(256, _round_up(B, _SUBLANE))
    in_pad = _round_up(f_in, _LANE)
    total = tm * in_pad * x.dtype.itemsize
    prev, widest = in_pad, in_pad
    for (w, b) in params:
        d_out_pad = _round_up(w.shape[1], _LANE)
        total += prev * d_out_pad * w.dtype.itemsize + d_out_pad * b.dtype.itemsize
        prev = d_out_pad
        widest = max(widest, d_out_pad)
    total += tm * prev * x.dtype.itemsize       # output tile
    total += 2 * tm * widest * 4                # f32 intermediate activations
    return 2 * total


# ---------------------------------------------------------------------------
# Path 2: tiled per-layer Linear + activation (general / large-shape path).
# ---------------------------------------------------------------------------
def _tiled_linear_act_kernel(x_ref, w_ref, b_ref, o_ref, acc_ref, *, act, valid_n):
    k = pl.program_id(2)

    @pl.when(k == 0)
    def _():
        acc_ref[...] = jnp.zeros_like(acc_ref)

    acc_ref[...] += jnp.dot(x_ref[...], w_ref[...],
                            preferred_element_type=jnp.float32)

    @pl.when(k == pl.num_programs(2) - 1)
    def _():
        y = acc_ref[...] + b_ref[...].astype(jnp.float32)
        y = _apply_activation(y, act, valid_n)
        o_ref[...] = y.astype(o_ref.dtype)


def _tiled_linear_act(x_p, w_p, b_p, act, valid_n, tm, out_dtype):
    m_pad, k_pad = x_p.shape
    _, n_pad = w_p.shape

    tk = _pick_tile(k_pad, (512, 384, 256, 128))
    if act == "softmax":
        # softmax normalizes across the full row; keep the whole (padded) row in one
        # N tile so masking of padded lanes is exact.
        # TODO(synk): blockwise (two-pass) softmax for very wide output layers.
        tn = n_pad
    else:
        tn = _pick_tile(n_pad, (256, 128))

    grid = (m_pad // tm, n_pad // tn, k_pad // tk)
    kernel = functools.partial(
        _tiled_linear_act_kernel, act=act,
        valid_n=valid_n if act == "softmax" else tn)

    return pl.pallas_call(
        kernel,
        out_shape=jax.ShapeDtypeStruct((m_pad, n_pad), out_dtype),
        grid=grid,
        in_specs=[
            pl.BlockSpec((tm, tk), lambda i, j, k: (i, k)),
            pl.BlockSpec((tk, tn), lambda i, j, k: (k, j)),
            pl.BlockSpec((1, tn), lambda i, j, k: (0, j)),
        ],
        out_specs=pl.BlockSpec((tm, tn), lambda i, j, k: (i, j)),
        scratch_shapes=[pltpu.VMEM((tm, tn), jnp.float32)],
        compiler_params=pltpu.CompilerParams(
            dimension_semantics=("parallel", "parallel", "arbitrary"),
            vmem_limit_bytes=_VMEM_LIMIT_BYTES,
        ),
    )(x_p, w_p, b_p)


def _tiled_forward(params, acts, x):
    B, f_in = x.shape
    dtype = x.dtype
    f_out = params[-1][0].shape[1]

    tm = min(128, _round_up(B, _SUBLANE))
    m_pad = _round_up(B, tm)
    k_pad = _round_up(f_in, _LANE)
    h = jnp.zeros((m_pad, k_pad), dtype).at[:B, :f_in].set(x)

    for (w, b), act in zip(params, acts):
        d_in, d_out = w.shape
        n_pad = _round_up(d_out, _LANE)
        w_p = jnp.zeros((k_pad, n_pad), w.dtype).at[:d_in, :d_out].set(w)
        b_p = jnp.zeros((1, n_pad), b.dtype).at[:, :d_out].set(b.reshape(1, -1))
        h = _tiled_linear_act(h, w_p, b_p, act, d_out, tm, dtype)
        k_pad = n_pad

    return h[:B, :f_out]


# ---------------------------------------------------------------------------
# FC_vec forward (dispatch) + parameter init + pure-JAX reference.
# ---------------------------------------------------------------------------
def fc_vec_forward(params, acts, x, *, force_tiled=False):
    """Forward pass of FC_vec: sequence of (Linear, activation) pairs."""
    if (not force_tiled) and _fused_vmem_estimate_bytes(params, x) <= _FUSED_VMEM_BUDGET:
        return _fused_forward(params, acts, x)
    return _tiled_forward(params, acts, x)


def init_fc_vec_params(key, in_chan, out_chan, l_hidden, dtype=jnp.float32):
    """Deterministic init mirroring torch.nn.Linear default (uniform +/- 1/sqrt(fan_in))."""
    dims = [in_chan] + list(l_hidden) + [out_chan]
    params = []
    for i in range(len(dims) - 1):
        key, kw, kb = jax.random.split(key, 3)
        fan_in, fan_out = dims[i], dims[i + 1]
        bound = 1.0 / jnp.sqrt(jnp.asarray(fan_in, dtype))
        w = jax.random.uniform(kw, (fan_in, fan_out), dtype, -bound, bound)
        b = jax.random.uniform(kb, (1, fan_out), dtype, -bound, bound)
        params.append((w, b))
    return params


def _ref_activation(y, act):
    if act == "linear":
        return y
    if act in ("relu", "relu_not_inplace"):
        return jnp.maximum(y, 0.0)
    if act == "sigmoid":
        return jax.nn.sigmoid(y)
    if act == "softplus":
        return jax.nn.softplus(y)
    if act == "tanh":
        return jnp.tanh(y)
    if act == "leakyrelu":
        return jnp.where(y >= 0.0, y, 0.2 * y)
    if act == "softmax":
        return jax.nn.softmax(y, axis=1)
    if act == "selu":
        return jax.nn.selu(y)
    if act == "elu":
        return jax.nn.elu(y)
    if act == "gelu":
        return jax.nn.gelu(y, approximate=False)
    raise ValueError(f"Unexpected activation: {act}")


def fc_vec_ref(params, acts, x):
    h = x
    for (w, b), act in zip(params, acts):
        h = jnp.dot(h, w, precision=jax.lax.Precision.HIGHEST) + b.reshape(1, -1)
        h = _ref_activation(h, act)
    return h


if __name__ == "__main__":
    key = jax.random.PRNGKey(0)

    # ---- Test 1: small FC_vec config -> fused single-kernel path ----
    batch, in_chan, out_chan = 2, 32, 2
    l_hidden = [64, 64]
    acts = ["relu", "tanh"] + ["linear"]          # activation + [out_activation]

    key, kx = jax.random.split(key)
    x = jax.random.normal(kx, (batch, in_chan), jnp.float32)
    params = init_fc_vec_params(key, in_chan, out_chan, l_hidden)

    out = jax.block_until_ready(fc_vec_forward(params, acts, x))
    ref = fc_vec_ref(params, acts, x)
    assert out.shape == (batch, out_chan), out.shape
    assert jnp.allclose(out, ref, atol=1e-5, rtol=1e-5), (out, ref)

    # ---- Test 2: force the tiled (M,N,K-grid, K-accumulator) path ----
    batch2, in2, out2 = 40, 200, 130
    l_hidden2 = [300]
    acts2 = ["leakyrelu"] + ["softmax"]

    key, kx2 = jax.random.split(key)
    x2 = jax.random.normal(kx2, (batch2, in2), jnp.float32)
    params2 = init_fc_vec_params(key, in2, out2, l_hidden2)

    out2_v = jax.block_until_ready(fc_vec_forward(params2, acts2, x2, force_tiled=True))
    ref2 = fc_vec_ref(params2, acts2, x2)
    assert out2_v.shape == (batch2, out2), out2_v.shape
    assert jnp.allclose(out2_v, ref2, atol=1e-4, rtol=1e-4), (out2_v, ref2)

    print("KERNEL_OK")
</pallas_src>

<mosaic_0001>
module attributes {stable_mosaic.version = 11 : i64} {
  func.func @_fused_mlp_kernel(%arg0: i32, %arg1: memref<8x128xf32, #tpu.memory_space<vmem>>, %arg2: memref<128x128xf32, #tpu.memory_space<vmem>>, %arg3: memref<1x128xf32, #tpu.memory_space<vmem>>, %arg4: memref<128x128xf32, #tpu.memory_space<vmem>>, %arg5: memref<1x128xf32, #tpu.memory_space<vmem>>, %arg6: memref<128x128xf32, #tpu.memory_space<vmem>>, %arg7: memref<1x128xf32, #tpu.memory_space<vmem>>, %arg8: memref<8x128xf32, #tpu.memory_space<vmem>>) attributes {dimension_semantics = [#tpu.dimension_semantics<parallel>], iteration_bounds = array<i64: 1>, scalar_prefetch = 0 : i64, scratch_operands = 0 : i64, tpu.core_type = #tpu.core_type<tc>, window_params = [{transform_indices = @transform_0, window_bounds = array<i64: 8, 128>}, {pipeline_mode = #tpu.pipeline_mode<synchronous>, transform_indices = @transform_1, window_bounds = array<i64: 128, 128>}, {pipeline_mode = #tpu.pipeline_mode<synchronous>, transform_indices = @transform_2, window_bounds = array<i64: 1, 128>}, {pipeline_mode = #tpu.pipeline_mode<synchronous>, transform_indices = @transform_3, window_bounds = array<i64: 128, 128>}, {pipeline_mode = #tpu.pipeline_mode<synchronous>, transform_indices = @transform_4, window_bounds = array<i64: 1, 128>}, {pipeline_mode = #tpu.pipeline_mode<synchronous>, transform_indices = @transform_5, window_bounds = array<i64: 128, 128>}, {pipeline_mode = #tpu.pipeline_mode<synchronous>, transform_indices = @transform_6, window_bounds = array<i64: 1, 128>}, {transform_indices = @transform_7, window_bounds = array<i64: 8, 128>}]} {
    %c0 = arith.constant 0 : index
    %c0_0 = arith.constant 0 : index
    %0 = vector.load %arg1[%c0, %c0_0] : memref<8x128xf32, #tpu.memory_space<vmem>>, vector<8x128xf32>
    %c0_1 = arith.constant 0 : index
    %c0_2 = arith.constant 0 : index
    %1 = vector.load %arg2[%c0_1, %c0_2] : memref<128x128xf32, #tpu.memory_space<vmem>>, vector<128x128xf32>
    %c0_3 = arith.constant 0 : index
    %c0_4 = arith.constant 0 : index
    %2 = vector.load %arg3[%c0_3, %c0_4] : memref<1x128xf32, #tpu.memory_space<vmem>>, vector<1x128xf32>
    %cst = arith.constant dense<0.000000e+00> : vector<8x128xf32>
    %3 = tpu.matmul %0, %1, %cst {dimension_numbers = #tpu.dot_dimension_numbers<[1], [0], [0], [1], [0, 0, 1, 1], [], []>} : vector<8x128xf32>, vector<128x128xf32>, vector<8x128xf32> -> vector<8x128xf32>
    %4 = vector.broadcast %2 : vector<1x128xf32> to vector<8x128xf32>
    %5 = arith.addf %3, %4 : vector<8x128xf32>
    %cst_5 = arith.constant 0.000000e+00 : f32
    %6 = vector.broadcast %cst_5 : f32 to vector<8x128xf32>
    %7 = arith.maximumf %5, %6 : vector<8x128xf32>
    %c0_6 = arith.constant 0 : index
    %c0_7 = arith.constant 0 : index
    %8 = vector.load %arg4[%c0_6, %c0_7] : memref<128x128xf32, #tpu.memory_space<vmem>>, vector<128x128xf32>
    %c0_8 = arith.constant 0 : index
    %c0_9 = arith.constant 0 : index
    %9 = vector.load %arg5[%c0_8, %c0_9] : memref<1x128xf32, #tpu.memory_space<vmem>>, vector<1x128xf32>
    %cst_10 = arith.constant dense<0.000000e+00> : vector<8x128xf32>
    %10 = tpu.matmul %7, %8, %cst_10 {dimension_numbers = #tpu.dot_dimension_numbers<[1], [0], [0], [1], [0, 0, 1, 1], [], []>} : vector<8x128xf32>, vector<128x128xf32>, vector<8x128xf32> -> vector<8x128xf32>
    %11 = vector.broadcast %9 : vector<1x128xf32> to vector<8x128xf32>
    %12 = arith.addf %10, %11 : vector<8x128xf32>
    %13 = math.tanh %12 : vector<8x128xf32>
    %c0_11 = arith.constant 0 : index
    %c0_12 = arith.constant 0 : index
    %14 = vector.load %arg6[%c0_11, %c0_12] : memref<128x128xf32, #tpu.memory_space<vmem>>, vector<128x128xf32>
    %c0_13 = arith.constant 0 : index
    %c0_14 = arith.constant 0 : index
    %15 = vector.load %arg7[%c0_13, %c0_14] : memref<1x128xf32, #tpu.memory_space<vmem>>, vector<1x128xf32>
    %cst_15 = arith.constant dense<0.000000e+00> : vector<8x128xf32>
    %16 = tpu.matmul %13, %14, %cst_15 {dimension_numbers = #tpu.dot_dimension_numbers<[1], [0], [0], [1], [0, 0, 1, 1], [], []>} : vector<8x128xf32>, vector<128x128xf32>, vector<8x128xf32> -> vector<8x128xf32>
    %17 = vector.broadcast %15 : vector<1x128xf32> to vector<8x128xf32>
    %18 = arith.addf %16, %17 : vector<8x128xf32>
    %c0_16 = arith.constant 0 : index
    %c0_17 = arith.constant 0 : index
    %19 = vector.load %arg8[%c0_16, %c0_17] : memref<8x128xf32, #tpu.memory_space<vmem>>, vector<8x128xf32>
    tpu.vector_store %arg8[%c0_16, %c0_17], %18 {strides = array<i32>} : memref<8x128xf32, #tpu.memory_space<vmem>>, vector<8x128xf32>,
    return
  }
  func.func @transform_0(%arg0: i32) -> (i32, i32) {
    %c0_i32 = arith.constant 0 : i32
    %c0_i32_0 = arith.constant 0 : i32
    return %arg0, %c0_i32 : i32, i32
  }
  func.func @transform_1(%arg0: i32) -> (i32, i32) {
    %c0_i32 = arith.constant 0 : i32
    %c0_i32_0 = arith.constant 0 : i32
    %c0_i32_1 = arith.constant 0 : i32
    return %c0_i32, %c0_i32_0 : i32, i32
  }
  func.func @transform_2(%arg0: i32) -> (i32, i32) {
    %c0_i32 = arith.constant 0 : i32
    %c0_i32_0 = arith.constant 0 : i32
    %c0_i32_1 = arith.constant 0 : i32
    return %c0_i32, %c0_i32_0 : i32, i32
  }
  func.func @transform_3(%arg0: i32) -> (i32, i32) {
    %c0_i32 = arith.constant 0 : i32
    %c0_i32_0 = arith.constant 0 : i32
    %c0_i32_1 = arith.constant 0 : i32
    return %c0_i32, %c0_i32_0 : i32, i32
  }
  func.func @transform_4(%arg0: i32) -> (i32, i32) {
    %c0_i32 = arith.constant 0 : i32
    %c0_i32_0 = arith.constant 0 : i32
    %c0_i32_1 = arith.constant 0 : i32
    return %c0_i32, %c0_i32_0 : i32, i32
  }
  func.func @transform_5(%arg0: i32) -> (i32, i32) {
    %c0_i32 = arith.constant 0 : i32
    %c0_i32_0 = arith.constant 0 : i32
    %c0_i32_1 = arith.constant 0 : i32
    return %c0_i32, %c0_i32_0 : i32, i32
  }
  func.func @transform_6(%arg0: i32) -> (i32, i32) {
    %c0_i32 = arith.constant 0 : i32
    %c0_i32_0 = arith.constant 0 : i32
    %c0_i32_1 = arith.constant 0 : i32
    return %c0_i32, %c0_i32_0 : i32, i32
  }
  func.func @transform_7(%arg0: i32) -> (i32, i32) {
    %c0_i32 = arith.constant 0 : i32
    %c0_i32_0 = arith.constant 0 : i32
    return %arg0, %c0_i32 : i32, i32
  }
}

</mosaic_0001>

<bundles_post_ra>
// kernel: tpu_custom_call.1
= control target key start
LH: loop header
LB: loop body
LE: loop exit
PB: predicated region body
PF: predicated region fallthrough
CT: control target
= control target key end

     0   :  { %12 = vsyncpa [#allocation3], 0  ;;  %s899_s0 = inlined_call_operand.hbm [shape: f32[8,128], index: 0, kind: input, shape index: {}]   ;;  %s900_s1 = inlined_call_operand.hbm [shape: f32[128,128], index: 1, kind: input, shape index: {}]   ;;  %s901_s2 = inlined_call_operand.vmem [shape: f32[1,128], index: 2, kind: input, shape index: {}]   ;;  %s902_s3 = inlined_call_operand.hbm [shape: f32[128,128], index: 3, kind: input, shape index: {}]   ;;  %s903_s4 = inlined_call_operand.vmem [shape: f32[1,128], index: 4, kind: input, shape index: {}]   ;;  %s904_s5 = inlined_call_operand.hbm [shape: f32[128,128], index: 5, kind: input, shape index: {}]   ;;  %s905_s6 = inlined_call_operand.vmem [shape: f32[1,128], index: 6, kind: input, shape index: {}]   ;;  %s906_s7 = inlined_call_operand.hbm [shape: f32[8,128], index: 7, kind: output, shape index: {}]  }
   0x1   :  { %13 = vsyncpa [#allocation6], 0 }
   0x2   :  { %14 = vsyncpa [#allocation9], 0 }
   0x3   :  { %15 = vsyncpa [#allocation4], 0  ;;  %s741_s24 = smov [#allocation5]   ;;  %s623_s28 = scalar_lea.hbm %s900_s1, 2048 }
   0x4   :  { %s31_s25 = sshll.u32 %s741_s24, 4  ;;  %p624_p0 = scmp.ne.s32.totalorder %s900_s1, %s623_s28  ;;  %s32_s25 = int_to_ptr.vmem [resolvable:$true] %s31_s25 }
   0x5   :  { %p627_p1 = scmp.lt.u32.totalorder %s623_s28, %s900_s1 }
   0x7   :  { %p629_p2 = pnand %p627_p1, %p624_p0 }
   0x9   :  { %632 = shalt.err (!%p629_p2)
}
   0xa   :  { %s633_s10 = scalar_lea.vmem %s32_s25, 2048  ;;  %p638_p4 = scmp.lt.s32.totalorder %s32_s25, %s32_s25 }
   0xb   :  { %p634_p3 = scmp.ne.s32.totalorder %s32_s25, %s633_s10  ;;  %p639_p5 = scmp.lt.s32.totalorder %s633_s10, %s633_s10 }
   0xd   :  { %p640_p6 = por %p639_p5, %p638_p4 }
   0xf   :  { %p641_p7 = pnand %p640_p6, %p634_p3 }
  0x11   :  { %644 = shalt.err (!%p641_p7)
}
  0x12   :  { %s742_s11 = smov 128   ;;  %s743_s12 = smov 8  }
  0x13   :  { %37 = dma.hbm_to_vmem [thread:$0]  %s900_s1, 2048, %s32_s25, [#allocation6], %s742_s11, %s742_s11, %s743_s12  }
  0x14   :  { %s744_s15 = smov [#allocation2]   ;;  %s745_s17 = smov [#allocation7]  }
  0x15   :  { %s22_s16 = sshll.u32 %s744_s15, 4  ;;  %s45_s18 = sshll.u32 %s745_s17, 4  ;;  %s23_s16 = int_to_ptr.vmem [resolvable:$true] %s22_s16  ;;  %s46_s18 = int_to_ptr.vmem [resolvable:$true] %s45_s18 }
  0x16   :  { %s645_s21 = scalar_lea.hbm %s899_s0, 128 }
  0x17   :  { %p646_p8 = scmp.ne.s32.totalorder %s899_s0, %s645_s21  ;;  %p649_p9 = scmp.lt.u32.totalorder %s645_s21, %s899_s0 }
  0x19   :  { %p651_p10 = pnand %p649_p9, %p646_p8 }
  0x1b   :  { %654 = shalt.err (!%p651_p10)
}
  0x1c   :  { %s655_s1 = scalar_lea.vmem %s23_s16, 128  ;;  %p660_p12 = scmp.lt.s32.totalorder %s23_s16, %s23_s16 }
  0x1d   :  { %p656_p11 = scmp.ne.s32.totalorder %s23_s16, %s655_s1  ;;  %p661_p13 = scmp.lt.s32.totalorder %s655_s1, %s655_s1 }
  0x1f   :  { %p662_p0 = por %p661_p13, %p660_p12 }
  0x21   :  { %p663_p1 = pnand %p662_p0, %p656_p11 }
  0x23   :  { %666 = shalt.err (!%p663_p1)
}
  0x24   :  { %25 = dma.hbm_to_vmem [thread:$0]  %s899_s0, 128, %s23_s16, [#allocation3]  }
  0x25   :  { %s667_s30 = scalar_lea.hbm %s902_s3, 2048 }
  0x26   :  { %p668_p2 = scmp.ne.s32.totalorder %s902_s3, %s667_s30  ;;  %p671_p3 = scmp.lt.u32.totalorder %s667_s30, %s902_s3 }
  0x28   :  { %p673_p4 = pnand %p671_p3, %p668_p2 }
  0x2a   :  { %676 = shalt.err (!%p673_p4)
}
  0x2b   :  { %s677_s14 = scalar_lea.vmem %s46_s18, 2048  ;;  %p682_p6 = scmp.lt.s32.totalorder %s46_s18, %s46_s18 }
  0x2c   :  { %p678_p5 = scmp.ne.s32.totalorder %s46_s18, %s677_s14  ;;  %p683_p7 = scmp.lt.s32.totalorder %s677_s14, %s677_s14 }
  0x2e   :  { %p684_p8 = por %p683_p7, %p682_p6 }
  0x30   :  { %p685_p9 = pnand %p684_p8, %p678_p5 }
  0x32   :  { %688 = shalt.err (!%p685_p9)
}
  0x33   :  { %51 = dma.hbm_to_vmem [thread:$0]  %s902_s3, 2048, %s46_s18, [#allocation6], %s742_s11, %s742_s11, %s743_s12  }
  0x34   :  { %s746_s16 = smov [#allocation8]   ;;  %s689_s21 = scalar_lea.hbm %s904_s5, 2048 }
  0x35   :  { %s59_s17 = sshll.u32 %s746_s16, 4  ;;  %p690_p10 = scmp.ne.s32.totalorder %s904_s5, %s689_s21  ;;  %s60_s17 = int_to_ptr.vmem [resolvable:$true] %s59_s17 }
  0x36   :  { %p693_p11 = scmp.lt.u32.totalorder %s689_s21, %s904_s5 }
  0x38   :  { %p695_p12 = pnand %p693_p11, %p690_p10 }
  0x3a   :  { %698 = shalt.err (!%p695_p12)
}
  0x3b   :  { %s699_s1 = scalar_lea.vmem %s60_s17, 2048  ;;  %p704_p0 = scmp.lt.s32.totalorder %s60_s17, %s60_s17 }
  0x3c   :  { %p700_p13 = scmp.ne.s32.totalorder %s60_s17, %s699_s1  ;;  %p705_p1 = scmp.lt.s32.totalorder %s699_s1, %s699_s1 }
  0x3e   :  { %p706_p2 = por %p705_p1, %p704_p0 }
  0x40   :  { %p707_p3 = pnand %p706_p2, %p700_p13 }
  0x42   :  { %710 = shalt.err (!%p707_p3)
}
  0x43   :  { %65 = dma.hbm_to_vmem [thread:$0]  %s904_s5, 2048, %s60_s17, [#allocation9], %s742_s11, %s742_s11, %s743_s12  }
  0x44   :  { %733 = dma.done.wait [#allocation3], 128  }
  0x45   :  { %734 = vsyncadd [#allocation3], 4294967168 }
  0x46   :  { %735 = dma.done.wait [#allocation6], 4096  }
  0x47   :  { %736 = vsyncadd [#allocation6], 4294963200 }
  0x48   :  { %737 = dma.done.wait [#allocation9], 2048  }
  0x49   :  { %738 = vsyncadd [#allocation9], 4294965248  ;;  %v747_v0 = vmov 0.0|0.0   ;;  %vm748_vm0 = vmmov 0   ;;  %v749_v1 = vmov 0.0   ;;  %v81_v2 = vld [vmem:[#allocation5] sm:$0xff] }
  0x4a   :  { %539 = vmatprep.subr.bf16.mxu0 %v747_v0  ;;  %466 = vmatprep.mubr.msk.f32.mxu0 %vm748_vm0, %v749_v1  ;;  %v82_v3 = vld [vmem:[#allocation5 + $0x8] sm:$0xff]  ;;  %v83_v4 = vld [vmem:[#allocation5 + $0x10] sm:$0xff]  ;;  %v84_v6 = vld [vmem:[#allocation5 + $0x18] sm:$0xff]  ;;  %s750_s28 = smov [#allocation10]  }
  0x4b   :  { %563 = vmatprep.subr.bf16.mxu1 %v747_v0  ;;  %501 = vmatprep.mubr.msk.f32.mxu1 %vm748_vm0, %v749_v1  ;;  %v540_v5 = vpack.c.bf16 %v82_v3, %v81_v2  ;;  %v543_v7 = vpack.c.bf16 %v84_v6, %v83_v4  ;;  %v85_v8 = vld [vmem:[#allocation5 + $0x20] sm:$0xff]  ;;  %v86_v9 = vld [vmem:[#allocation5 + $0x28] sm:$0xff]  ;;  %v177_v12 = vld [vmem:[#allocation7 + $0x10] sm:$0xff]  ;;  %s369_s29 = sshll.u32 %s750_s28, 4  ;;  %s370_s29 = int_to_ptr.vmem [resolvable:$true] %s369_s29 }
  0x4c   :  { %v175_v10 = vld [vmem:[#allocation7] sm:$0xff]  ;;  %v176_v11 = vld [vmem:[#allocation7 + $0x8] sm:$0xff]  ;;  %v178_v13 = vld [vmem:[#allocation7 + $0x18] sm:$0xff]  ;;  %v546_v14 = vpack.c.bf16 %v86_v9, %v85_v8  ;;  %s711_s30 = scalar_lea.vmem %s370_s29, 128  ;;  %p716_p5 = scmp.lt.s32.totalorder %s370_s29, %s370_s29 }
  0x4d   :  { %541 = vmatpush3.bf16.msra.mxu0 %v540_v5  ;;  %v564_v15 = vpack.c.bf16 %v176_v11, %v175_v10  ;;  %v87_v16 = vld [vmem:[#allocation5 + $0x30] sm:$0xff]  ;;  %v88_v17 = vld [vmem:[#allocation5 + $0x38] sm:$0xff]  ;;  %v567_v18 = vpack.c.bf16 %v178_v13, %v177_v12  ;;  %v179_v19 = vld [vmem:[#allocation7 + $0x20] sm:$0xff]  ;;  %p712_p4 = scmp.ne.s32.totalorder %s370_s29, %s711_s30  ;;  %p717_p6 = scmp.lt.s32.totalorder %s711_s30, %s711_s30 }
  0x4e   :  { %542 = vmatprep.subr.bf16.mxu0 %v747_v0  ;;  %v180_v20 = vld [vmem:[#allocation7 + $0x28] sm:$0xff]  ;;  %v549_v21 = vpack.c.bf16 %v88_v17, %v87_v16  ;;  %v89_v22 = vld [vmem:[#allocation5 + $0x40] sm:$0xff]  ;;  %v181_v25 = vld [vmem:[#allocation7 + $0x30] sm:$0xff] }
  0x4f   :  { %565 = vmatpush3.bf16.msra.mxu1 %v564_v15  ;;  %v90_v23 = vld [vmem:[#allocation5 + $0x48] sm:$0xff]  ;;  %v570_v24 = vpack.c.bf16 %v180_v20, %v179_v19  ;;  %v182_v26 = vld [vmem:[#allocation7 + $0x38] sm:$0xff]  ;;  %v91_v28 = vld [vmem:[#allocation5 + $0x50] sm:$0xff]  ;;  %p718_p7 = por %p717_p6, %p716_p5 }
  0x50   :  { %566 = vmatprep.subr.bf16.mxu1 %v747_v0  ;;  %v552_v27 = vpack.c.bf16 %v90_v23, %v89_v22  ;;  %v92_v29 = vld [vmem:[#allocation5 + $0x58] sm:$0xff]  ;;  %v573_v30 = vpack.c.bf16 %v182_v26, %v181_v25  ;;  %v183_v31 = vld [vmem:[#allocation7 + $0x40] sm:$0xff]  ;;  %v184_v32 = vld [vmem:[#allocation7 + $0x48] sm:$0xff] }
  0x51   :  { %544 = vmatpush3.bf16.msra.mxu0 %v543_v7  ;;  %v555_v33 = vpack.c.bf16 %v92_v29, %v91_v28  ;;  %v93_v34 = vld [vmem:[#allocation5 + $0x60] sm:$0xff]  ;;  %v94_v35 = vld [vmem:[#allocation5 + $0x68] sm:$0xff]  ;;  %v576_v36 = vpack.c.bf16 %v184_v32, %v183_v31  ;;  %v185_v37 = vld [vmem:[#allocation7 + $0x50] sm:$0xff]  ;;  %p719_p8 = pnand %p718_p7, %p712_p4 }
  0x52   :  { %545 = vmatprep.subr.bf16.mxu0 %v747_v0  ;;  %v186_v38 = vld [vmem:[#allocation7 + $0x58] sm:$0xff]  ;;  %v558_v39 = vpack.c.bf16 %v94_v35, %v93_v34  ;;  %v95_v40 = vld [vmem:[#allocation5 + $0x70] sm:$0xff]  ;;  %v187_v43 = vld [vmem:[#allocation7 + $0x60] sm:$0xff] }
  0x53   :  { %568 = vmatpush3.bf16.msra.mxu1 %v567_v18  ;;  %v96_v41 = vld [vmem:[#allocation5 + $0x78] sm:$0xff]  ;;  %v579_v42 = vpack.c.bf16 %v186_v38, %v185_v37  ;;  %v188_v44 = vld [vmem:[#allocation7 + $0x68] sm:$0xff]  ;;  %v189_v48 = vld [vmem:[#allocation7 + $0x70] sm:$0xff] }
  0x54   :  { %569 = vmatprep.subr.bf16.mxu1 %v747_v0  ;;  %v561_v45 = vpack.c.bf16 %v96_v41, %v95_v40  ;;  %v582_v46 = vpack.c.bf16 %v188_v44, %v187_v43  ;;  %v80_v47 = vld [vmem:[#allocation2] sm:$0xff]  ;;  %v269_v51 = vld [vmem:[#allocation8] sm:$0xff]  ;;  %v270_v52 = vld [vmem:[#allocation8 + $0x8] sm:$0xff] }
  0x55   :  { %547 = vmatpush3.bf16.msra.mxu0 %v546_v14  ;;  %v190_v49 = vld [vmem:[#allocation7 + $0x78] sm:$0xff]  ;;  %v271_v53 = vld [vmem:[#allocation8 + $0x10] sm:$0xff]  ;;  %v588_v54 = vpack.c.bf16 %v270_v52, %v269_v51  ;;  %v273_v57 = vld [vmem:[#allocation8 + $0x20] sm:$0xff] }
  0x56   :  { %548 = vmatprep.subr.bf16.mxu0 %v747_v0  ;;  %v585_v50 = vpack.c.bf16 %v190_v49, %v189_v48  ;;  %v272_v55 = vld [vmem:[#allocation8 + $0x18] sm:$0xff]  ;;  %v274_v58 = vld [vmem:[#allocation8 + $0x28] sm:$0xff]  ;;  %v275_v60 = vld [vmem:[#allocation8 + $0x30] sm:$0xff] }
  0x57   :  { %571 = vmatpush3.bf16.msra.mxu1 %v570_v24  ;;  %v591_v56 = vpack.c.bf16 %v272_v55, %v271_v53  ;;  %v594_v59 = vpack.c.bf16 %v274_v58, %v273_v57  ;;  %v276_v61 = vld [vmem:[#allocation8 + $0x38] sm:$0xff]  ;;  %v277_v63 = vld [vmem:[#allocation8 + $0x40] sm:$0xff]  ;;  %v279_v8 = vld [vmem:[#allocation8 + $0x50] sm:$0xff] }
  0x58   :  { %572 = vmatprep.subr.bf16.mxu1 %v747_v0  ;;  %v597_v62 = vpack.c.bf16 %v276_v61, %v275_v60  ;;  %v380_v3 = vld [vmem:[%s901_s2] ss:$0 sm:$0xff]  ;;  %v281_v11 = vld [vmem:[#allocation8 + $0x60] sm:$0xff]  ;;  %v282_v12 = vld [vmem:[#allocation8 + $0x68] sm:$0xff] }
  0x59   :  { %550 = vmatpush3.bf16.msra.mxu0 %v549_v21  ;;  %v280_v9 = vld [vmem:[#allocation8 + $0x58] sm:$0xff]  ;;  %v606_v13 = vpack.c.bf16 %v282_v12, %v281_v11  ;;  %v283_v14 = vld [vmem:[#allocation8 + $0x70] sm:$0xff] }
  0x5a   :  { %551 = vmatprep.subr.bf16.mxu0 %v747_v0  ;;  %v603_v10 = vpack.c.bf16 %v280_v9, %v279_v8  ;;  %v284_v15 = vld [vmem:[#allocation8 + $0x78] sm:$0xff] }
  0x5b   :  { %574 = vmatpush3.bf16.msra.mxu1 %v573_v30  ;;  %v609_v16 = vpack.c.bf16 %v284_v15, %v283_v14  ;;  %v381_v17 = vld [vmem:[%s903_s4] ss:$0 sm:$0xff] }
  0x5c   :  { %575 = vmatprep.subr.bf16.mxu1 %v747_v0  ;;  %v382_v22 = vld [vmem:[%s905_s6] ss:$0 sm:$0xff] }
  0x5d   :  { %553 = vmatpush3.bf16.msra.mxu0 %v552_v27 }
  0x5e   :  { %554 = vmatprep.subr.bf16.mxu0 %v747_v0 }
  0x5f   :  { %577 = vmatpush3.bf16.msra.mxu1 %v576_v36 }
  0x60   :  { %578 = vmatprep.subr.bf16.mxu1 %v747_v0 }
  0x61   :  { %556 = vmatpush3.bf16.msra.mxu0 %v555_v33 }
  0x62   :  { %557 = vmatprep.subr.bf16.mxu0 %v747_v0 }
  0x63   :  { %580 = vmatpush3.bf16.msra.mxu1 %v579_v42 }
  0x64   :  { %581 = vmatprep.subr.bf16.mxu1 %v747_v0 }
  0x65   :  { %559 = vmatpush3.bf16.msra.mxu0 %v558_v39 }
  0x66   :  { %560 = vmatprep.subr.bf16.mxu0 %v747_v0 }
  0x67   :  { %583 = vmatpush3.bf16.msra.mxu1 %v582_v46 }
  0x68   :  { %584 = vmatprep.subr.bf16.mxu1 %v747_v0 }
  0x69   :  { %562 = vmatpush3.bf16.msra.mxu0 %v561_v45 }
  0x6a   :  { %587 = vmatprep.subr.bf16.mxu0 %v747_v0 }
  0x6b   :  { %586 = vmatpush3.bf16.msra.mxu1 %v585_v50 }
  0x6c   :  { %467 = vmatmul.mubr.f32.vlgmr.msra.gmra.mrb[0].mxu0 %v80_v47 }
  0x6d   :  { %536 = vmatprep.mubr.msk.f32.mxu0 %vm748_vm0, %v749_v1  ;;  %589 = vmatpush3.bf16.msra.mxu0 %v588_v54  ;;  %v278_v1 = vld [vmem:[#allocation8 + $0x48] sm:$0xff] }
  0x6e   :  { %590 = vmatprep.subr.bf16.mxu0 %v747_v0  ;;  %v600_v2 = vpack.c.bf16 %v278_v1, %v277_v63 }
  0x71   :  { %592 = vmatpush3.bf16.msra.mxu0 %v591_v56 }
  0x72   :  { %593 = vmatprep.subr.bf16.mxu0 %v747_v0 }
  0x75   :  { %595 = vmatpush3.bf16.msra.mxu0 %v594_v59 }
  0x76   :  { %596 = vmatprep.subr.bf16.mxu0 %v747_v0 }
  0x79   :  { %598 = vmatpush3.bf16.msra.mxu0 %v597_v62 }
  0x7a   :  { %599 = vmatprep.subr.bf16.mxu0 %v747_v0 }
  0x7d   :  { %601 = vmatpush3.bf16.msra.mxu0 %v600_v2 }
  0x7e   :  { %602 = vmatprep.subr.bf16.mxu0 %v747_v0 }
  0x81   :  { %604 = vmatpush3.bf16.msra.mxu0 %v603_v10 }
  0x82   :  { %605 = vmatprep.subr.bf16.mxu0 %v747_v0 }
  0x85   :  { %607 = vmatpush3.bf16.msra.mxu0 %v606_v13 }
  0x86   :  { %608 = vmatprep.subr.bf16.mxu0 %v747_v0 }
  0x89   :  { %610 = vmatpush3.bf16.msra.mxu0 %v609_v16 }
 0x13f   :  { %v170_v4 = vpop.f32.mrb[0].mxu0 }
 0x140   :  { %v171_v5 = vadd.f32 %v380_v3, %v170_v4  ;;  %v468_v6 = vpop.f32.mrb[1].mxu0 }
 0x142   :  { %v174_v7 = vmax.f32 %v171_v5, 0.0 }
 0x144   :  { %502 = vmatmul.mubr.f32.vlgmr.msra.gmra.mrb[0].mxu1 %v174_v7 }
 0x217   :  { %v264_v18 = vpop.f32.mrb[0].mxu1 }
 0x218   :  { %v265_v19 = vadd.f32 %v381_v17, %v264_v18  ;;  %v503_v20 = vpop.f32.mrb[1].mxu1 }
 0x21a   :  { %621 = vtanh.f32 %v265_v19 }
 0x224   :  { %v622_v21 = vpop.eup %621 }
 0x225   :  { %537 = vmatmul.mubr.f32.vlgmr.msra.gmra.mrb[2].mxu0 %v622_v21 }
 0x2f8   :  { %v358_v23 = vpop.f32.mrb[2].mxu0 }
 0x2f9   :  { %v359_v24 = vadd.f32 %v382_v22, %v358_v23  ;;  %v538_v0 = vpop.f32.mrb[3].mxu0 }
 0x2fb   :  { %362 = vst [vmem:[#allocation10] sm:$0xff] %v359_v24 }
 0x2fc   :  { %722 = shalt.err (!%p719_p8)
}
 0x2fd   :  { %s723_s9 = scalar_lea.hbm %s906_s7, 128 }
 0x2fe   :  { %p724_p9 = scmp.ne.s32.totalorder %s906_s7, %s723_s9  ;;  %p727_p10 = scmp.lt.u32.totalorder %s723_s9, %s906_s7 }
 0x300   :  { %p729_p11 = pnand %p727_p10, %p724_p9 }
 0x302   :  { %732 = shalt.err (!%p729_p11)
}
 0x303   :  { %372 = dma.vmem_to_hbm [thread:$0]  %s370_s29, 128, %s906_s7, [#allocation4]  }
 0x304   :  { %739 = dma.done.wait [#allocation4], 128  }
 0x305   :  { %740 = vsyncadd [#allocation4], 4294967168 }
 0x306   :  { %376 = vsyncpa [#allocation3], 1 }
 0x307   :  { %377 = vsyncpa [#allocation6], 1 }
 0x308   :  { %378 = vsyncpa [#allocation9], 1 }
 0x309   :  { %379 = vsyncpa [#allocation4], 1 }

</bundles_post_ra>
